<compile_context>
chip_gen: v7x
topology: tpu7x:2x2x1
jax: 0.10.0
libtpu: 0.0.40
codegen_flags: <defaults>
</compile_context>

<pallas_src>
import functools

import jax
import jax.numpy as jnp
from jax.experimental import pallas as pl
from jax.experimental.pallas import tpu as pltpu

LANES = 128          # vreg lane width
SUBLANES = 8         # vreg sublane count
BLOCK_ROWS = 1024    # slab rows per grid step (1024x128 f32 = 0.5 MiB / buffer)
MAX_CHUNKS = 2       # outer parallel chunks (>=2 lets v7x use both TensorCores)


def _sse_partial_kernel(rx_ref, x_ref, out_ref, *, total_rows, bpc, needs_mask):
    """Per-chunk partial sum of squared errors, kept lane-dense as (8, 128).

    Grid = (chunks [parallel], blocks-per-chunk [arbitrary]). The (1, 8, 128)
    output block is resident across the inner axis and accumulated in place.
    """
    o = pl.program_id(0)
    j = pl.program_id(1)
    br, lanes = rx_ref.shape

    # Native-dtype loads (f32 or bf16); upcast in-kernel so bf16 inputs move
    # half the HBM bytes.
    diff = rx_ref[...].astype(jnp.float32) - x_ref[...].astype(jnp.float32)
    sq = diff * diff

    if needs_mask:
        # Logical start row of this grid cell. Rows past the real slab (grid
        # overshoot of the last block, or a clamped redundant trailing cell)
        # are zeroed before accumulation. Static no-op when tiling is exact.
        start = (o * bpc + j) * br
        row_ids = start + jax.lax.broadcasted_iota(jnp.int32, (br, lanes), 0)
        sq = jnp.where(row_ids < total_rows, sq, 0.0)

    # (br, 128) -> (br/8, 8, 128) -> sum over leading axis: pure vreg adds
    # (VPU only), no cross-lane work in the hot loop.
    partial = jnp.sum(sq.reshape(br // SUBLANES, SUBLANES, lanes), axis=0)

    @pl.when(j == 0)
    def _init():
        out_ref[...] = jnp.zeros_like(out_ref)

    out_ref[...] += partial[None, :, :]


def _finalize_kernel(scal_ref, part_ref, mu_ref, lv_ref, out_ref):
    """Tiny epilogue: total recon loss, KL divergence, capacity-weighted combine."""
    recon = jnp.sum(part_ref[...])
    mu = mu_ref[...]
    lv = lv_ref[...]
    kld = -0.5 * jnp.sum(1.0 + lv - mu * mu - jnp.exp(lv))
    c = scal_ref[0]
    gamma = scal_ref[1]
    kldw = scal_ref[2]
    out_ref[0] = recon + gamma * kldw * jnp.abs(kld - c)
    out_ref[1] = recon
    out_ref[2] = kld


def _sse_partials(rx2d, x2d):
    """Pallas call computing per-chunk (8, 128) partial sums of (rx - x)^2."""
    rows = rx2d.shape[0]
    block_rows = min(BLOCK_ROWS, rows)            # rows is always a multiple of 8
    nblocks = pl.cdiv(rows, block_rows)
    nchunks = min(MAX_CHUNKS, nblocks)
    bpc = pl.cdiv(nblocks, nchunks)               # blocks per chunk
    needs_mask = (nblocks * block_rows != rows) or (nchunks * bpc != nblocks)

    def in_idx(o, j):
        # Clamp so redundant trailing grid cells re-read the last real block;
        # their contribution is fully masked out inside the kernel.
        return (jnp.minimum(o * bpc + j, nblocks - 1), 0)

    kernel = functools.partial(
        _sse_partial_kernel, total_rows=rows, bpc=bpc, needs_mask=needs_mask)

    return pl.pallas_call(
        kernel,
        out_shape=jax.ShapeDtypeStruct((nchunks, SUBLANES, LANES), jnp.float32),
        grid=(nchunks, bpc),
        in_specs=[pl.BlockSpec((block_rows, LANES), in_idx),
                  pl.BlockSpec((block_rows, LANES), in_idx)],
        out_specs=pl.BlockSpec((1, SUBLANES, LANES), lambda o, j: (o, 0, 0)),
        compiler_params=pltpu.CompilerParams(
            dimension_semantics=("parallel", "arbitrary")),
    )(rx2d, x2d)


def _finalize(scal, partials, mu, lv):
    """Single-step kernel combining partial SSE, KLD and the capacity term."""
    return pl.pallas_call(
        _finalize_kernel,
        out_shape=jax.ShapeDtypeStruct((3,), jnp.float32),
        grid=(1,),
        in_specs=[
            pl.BlockSpec(memory_space=pltpu.MemorySpace.SMEM),     # [c, gamma, kldw]
            pl.BlockSpec(partials.shape, lambda i: (0, 0, 0)),      # partial SSE
            pl.BlockSpec(mu.shape, lambda i: (0, 0)),               # mu (full block)
            pl.BlockSpec(lv.shape, lambda i: (0, 0)),               # log_var (full block)
        ],
        out_specs=pl.BlockSpec(memory_space=pltpu.MemorySpace.SMEM),
    )(scal, partials, mu, lv)


def _to_slab(a):
    """Flatten to a lane-dense (rows, 128) slab in its native f32/bf16 dtype.

    Common case (numel % 1024 == 0) is a pure reshape — no HBM copy. Only a
    ragged tail smaller than one (8, 128) tile is zero-padded (zeros are
    neutral for the squared-error sum).
    """
    if a.dtype != jnp.float32 and a.dtype != jnp.bfloat16:
        a = a.astype(jnp.float32)
    flat = a.reshape(-1)
    pad = (-flat.shape[0]) % (SUBLANES * LANES)
    if pad:
        flat = jnp.pad(flat, (0, pad))
    return flat.reshape(-1, LANES)


class BetaVAELoss:
    """JAX/Pallas re-implementation of BetaVAE_loss (forward path only)."""

    def __init__(self, kldw=1, beta=4, gamma=1000, max_capacity=25,
                 capacity_max_iter=100000.0, loss_type='B'):
        self.beta = beta                      # kept for parity; unused by forward()
        self.gamma = float(gamma)
        self.c_max = float(max_capacity)
        self.c_stop_iter = float(capacity_max_iter)
        self.num_iter = 0
        self.kldw = float(kldw)
        self.loss_type = loss_type            # forward() of the spec never branches on it
        # nn.Parameter(torch.Tensor([0.0])); unused by forward (gaussian_likelihood unused).
        self.log_scale = jnp.zeros((1,), jnp.float32)

    def __call__(self, recon_x, x, mu, log_var, z):
        self.num_iter += 1
        c = min(max(self.c_max / self.c_stop_iter * self.num_iter, 0.0), self.c_max)

        rx2d = _to_slab(recon_x)
        x2d = _to_slab(x)
        partials = _sse_partials(rx2d, x2d)

        scal = jnp.array([c, self.gamma, self.kldw], jnp.float32)
        out = _finalize(scal, partials,
                        mu.astype(jnp.float32), log_var.astype(jnp.float32))
        # [loss.mean(), recon_loss.mean(), kld_loss.mean()] — all scalars.
        return [out[0], out[1], out[2]]


if __name__ == "__main__":
    def reference(recon_x, x, mu, log_var, num_iter, gamma, kldw, c_max, c_stop):
        recon = jnp.sum((recon_x.astype(jnp.float32) - x.astype(jnp.float32)) ** 2)
        kld = -0.5 * jnp.sum(1.0 + log_var - mu ** 2 - jnp.exp(log_var))
        c = min(max(c_max / c_stop * num_iter, 0.0), c_max)
        loss = recon + gamma * kldw * jnp.abs(kld - c)
        return loss, recon, kld

    key = jax.random.PRNGKey(0)

    # --- Test 1: small shapes implied by the module (single block, no mask) ---
    k1, k2, k3, k4, k5, key = jax.random.split(key, 6)
    B, C, H, W, LATENT = 2, 4, 16, 16, 32
    recon_x = jax.random.normal(k1, (B, C, H, W), jnp.float32)
    x = jax.random.normal(k2, (B, C, H, W), jnp.float32)
    mu = jax.random.normal(k3, (B, LATENT), jnp.float32)
    log_var = jax.random.normal(k4, (B, LATENT), jnp.float32) * 0.1
    z = jax.random.normal(k5, (B, LATENT), jnp.float32)   # unused by forward

    mod = BetaVAELoss(kldw=1, beta=4, gamma=1000, max_capacity=25,
                      capacity_max_iter=100000.0, loss_type='B')
    loss, recon_loss, kld_loss = mod(recon_x, x, mu, log_var, z)
    jax.block_until_ready(loss)
    loss_r, recon_r, kld_r = reference(recon_x, x, mu, log_var, 1,
                                       1000.0, 1.0, 25.0, 100000.0)
    assert jnp.allclose(recon_loss, recon_r, rtol=1e-5, atol=1e-3), (recon_loss, recon_r)
    assert jnp.allclose(kld_loss, kld_r, rtol=1e-5, atol=1e-3), (kld_loss, kld_r)
    assert jnp.allclose(loss, loss_r, rtol=1e-5, atol=1e-2), (loss, loss_r)

    # --- Test 2: multi-block path (2 parallel chunks, ragged last block,
    #             clamped + fully-masked redundant trailing grid cell) ---
    k1, k2, k3, k4, k5, key = jax.random.split(key, 6)
    B2, C2, H2, W2, L2 = 2, 6, 224, 224, 16     # 602112 elems -> 4704 slab rows
    recon_x2 = jax.random.normal(k1, (B2, C2, H2, W2), jnp.float32)
    x2 = jax.random.normal(k2, (B2, C2, H2, W2), jnp.float32)
    mu2 = jax.random.normal(k3, (B2, L2), jnp.float32)
    log_var2 = jax.random.normal(k4, (B2, L2), jnp.float32) * 0.1
    z2 = jax.random.normal(k5, (B2, L2), jnp.float32)

    mod2 = BetaVAELoss()
    loss2, recon2, kld2 = mod2(recon_x2, x2, mu2, log_var2, z2)
    jax.block_until_ready(loss2)
    loss2_r, recon2_r, kld2_r = reference(recon_x2, x2, mu2, log_var2, 1,
                                          1000.0, 1.0, 25.0, 100000.0)
    assert jnp.allclose(recon2, recon2_r, rtol=1e-5, atol=1e-1), (recon2, recon2_r)
    assert jnp.allclose(kld2, kld2_r, rtol=1e-5, atol=1e-3), (kld2, kld2_r)
    assert jnp.allclose(loss2, loss2_r, rtol=1e-5, atol=1e-1), (loss2, loss2_r)

    print("KERNEL_OK")
</pallas_src>

<mosaic_0001>
module attributes {stable_mosaic.version = 11 : i64} {
  func.func @_sse_partial_kernel(%arg0: i32, %arg1: i32, %arg2: memref<16x128xf32, #tpu.memory_space<vmem>>, %arg3: memref<16x128xf32, #tpu.memory_space<vmem>>, %arg4: memref<1x8x128xf32, #tpu.memory_space<vmem>>) attributes {dimension_semantics = [#tpu.dimension_semantics<parallel>, #tpu.dimension_semantics<arbitrary>], iteration_bounds = array<i64: 1, 1>, scalar_prefetch = 0 : i64, scratch_operands = 0 : i64, tpu.core_type = #tpu.core_type<tc>, window_params = [{transform_indices = @transform_0, window_bounds = array<i64: 16, 128>}, {transform_indices = @transform_1, window_bounds = array<i64: 16, 128>}, {transform_indices = @transform_2, window_bounds = array<i64: 1, 8, 128>}]} {
    %c0 = arith.constant 0 : index
    %c0_0 = arith.constant 0 : index
    %0 = vector.load %arg2[%c0, %c0_0] : memref<16x128xf32, #tpu.memory_space<vmem>>, vector<16x128xf32>
    %c0_1 = arith.constant 0 : index
    %c0_2 = arith.constant 0 : index
    %1 = vector.load %arg3[%c0_1, %c0_2] : memref<16x128xf32, #tpu.memory_space<vmem>>, vector<16x128xf32>
    %2 = arith.subf %0, %1 : vector<16x128xf32>
    %3 = arith.mulf %2, %2 : vector<16x128xf32>
    %4 = vector.shape_cast %3 : vector<16x128xf32> to vector<2x8x128xf32>
    %cst = arith.constant dense<0.000000e+00> : vector<8x128xf32>
    %5 = vector.multi_reduction <add>, %4, %cst [0] : vector<2x8x128xf32> to vector<8x128xf32>
    %c0_i32 = arith.constant 0 : i32
    %6 = arith.cmpi eq, %arg1, %c0_i32 : i32
    %7 = arith.extui %6 : i1 to i32
    %c0_i32_3 = arith.constant 0 : i32
    %8 = arith.cmpi ne, %7, %c0_i32_3 : i32
    scf.if %8 {
      %cst_10 = arith.constant 0.000000e+00 : f32
      %13 = vector.broadcast %cst_10 : f32 to vector<1x8x128xf32>
      %c0_11 = arith.constant 0 : index
      %c0_12 = arith.constant 0 : index
      %c0_13 = arith.constant 0 : index
      %14 = vector.load %arg4[%c0_11, %c0_12, %c0_13] : memref<1x8x128xf32, #tpu.memory_space<vmem>>, vector<1x8x128xf32>
      tpu.vector_store %arg4[%c0_11, %c0_12, %c0_13], %13 {strides = array<i32>} : memref<1x8x128xf32, #tpu.memory_space<vmem>>, vector<1x8x128xf32>,
    } else {
    }
    %c0_4 = arith.constant 0 : index
    %c0_5 = arith.constant 0 : index
    %c0_6 = arith.constant 0 : index
    %9 = vector.load %arg4[%c0_4, %c0_5, %c0_6] : memref<1x8x128xf32, #tpu.memory_space<vmem>>, vector<1x8x128xf32>
    %10 = vector.shape_cast %5 : vector<8x128xf32> to vector<1x8x128xf32>
    %11 = arith.addf %9, %10 : vector<1x8x128xf32>
    %c0_7 = arith.constant 0 : index
    %c0_8 = arith.constant 0 : index
    %c0_9 = arith.constant 0 : index
    %12 = vector.load %arg4[%c0_7, %c0_8, %c0_9] : memref<1x8x128xf32, #tpu.memory_space<vmem>>, vector<1x8x128xf32>
    tpu.vector_store %arg4[%c0_7, %c0_8, %c0_9], %11 {strides = array<i32>} : memref<1x8x128xf32, #tpu.memory_space<vmem>>, vector<1x8x128xf32>,
    return
  }
  func.func @transform_0(%arg0: i32, %arg1: i32) -> (i32, i32) {
    %c1_i32 = arith.constant 1 : i32
    %0 = arith.muli %arg0, %c1_i32 : i32
    %1 = arith.addi %0, %arg1 : i32
    %c0_i32 = arith.constant 0 : i32
    %2 = arith.minsi %1, %c0_i32 : i32
    %c0_i32_0 = arith.constant 0 : i32
    %c0_i32_1 = arith.constant 0 : i32
    return %2, %c0_i32_0 : i32, i32
  }
  func.func @transform_1(%arg0: i32, %arg1: i32) -> (i32, i32) {
    %c1_i32 = arith.constant 1 : i32
    %0 = arith.muli %arg0, %c1_i32 : i32
    %1 = arith.addi %0, %arg1 : i32
    %c0_i32 = arith.constant 0 : i32
    %2 = arith.minsi %1, %c0_i32 : i32
    %c0_i32_0 = arith.constant 0 : i32
    %c0_i32_1 = arith.constant 0 : i32
    return %2, %c0_i32_0 : i32, i32
  }
  func.func @transform_2(%arg0: i32, %arg1: i32) -> (i32, i32, i32) {
    %c0_i32 = arith.constant 0 : i32
    %c0_i32_0 = arith.constant 0 : i32
    %c0_i32_1 = arith.constant 0 : i32
    return %arg0, %c0_i32, %c0_i32_0 : i32, i32, i32
  }
}

</mosaic_0001>

<bundles_post_ra>
// kernel: tpu_custom_call.1
= control target key start
LH: loop header
LB: loop body
LE: loop exit
PB: predicated region body
PF: predicated region fallthrough
CT: control target
= control target key end

     0   :  { %7 = vsyncpa [#allocation3], 0  ;;  %s231_s0 = inlined_call_operand.hbm [shape: f32[16,128], index: 0, kind: input, shape index: {}]   ;;  %s232_s1 = inlined_call_operand.hbm [shape: f32[16,128], index: 1, kind: input, shape index: {}]   ;;  %s233_s2 = inlined_call_operand.hbm [shape: f32[1,8,128], index: 2, kind: output, shape index: {}]  }
   0x1   :  { %8 = vsyncpa [#allocation6], 0 }
   0x2   :  { %9 = vsyncpa [#allocation4], 0  ;;  %s175_s9 = smov [#allocation2]   ;;  %s103_s13 = scalar_lea.hbm %s231_s0, 256 }
   0x3   :  { %s21_s10 = sshll.u32 %s175_s9, 4  ;;  %p104_p0 = scmp.ne.s32.totalorder %s231_s0, %s103_s13  ;;  %s22_s10 = int_to_ptr.vmem [resolvable:$true] %s21_s10 }
   0x4   :  { %p107_p1 = scmp.lt.u32.totalorder %s103_s13, %s231_s0 }
   0x6   :  { %p109_p2 = pnand %p107_p1, %p104_p0 }
   0x8   :  { %112 = shalt.err (!%p109_p2)
}
   0x9   :  { %s113_s18 = scalar_lea.vmem %s22_s10, 256  ;;  %p118_p4 = scmp.lt.s32.totalorder %s22_s10, %s22_s10 }
   0xa   :  { %p114_p3 = scmp.ne.s32.totalorder %s22_s10, %s113_s18  ;;  %p119_p5 = scmp.lt.s32.totalorder %s113_s18, %s113_s18 }
   0xc   :  { %p120_p6 = por %p119_p5, %p118_p4 }
   0xe   :  { %p121_p7 = pnand %p120_p6, %p114_p3 }
  0x10   :  { %124 = shalt.err (!%p121_p7)
}
  0x11   :  { %s176_s19 = smov 128   ;;  %s177_s20 = smov 8  }
  0x12   :  { %27 = dma.hbm_to_vmem [thread:$0]  %s231_s0, 256, %s22_s10, [#allocation3], %s176_s19, %s176_s19, %s177_s20  }
  0x13   :  { %s178_s23 = smov [#allocation5]   ;;  %s125_s27 = scalar_lea.hbm %s232_s1, 256 }
  0x14   :  { %s39_s24 = sshll.u32 %s178_s23, 4  ;;  %p126_p8 = scmp.ne.s32.totalorder %s232_s1, %s125_s27  ;;  %s40_s24 = int_to_ptr.vmem [resolvable:$true] %s39_s24 }
  0x15   :  { %p129_p9 = scmp.lt.u32.totalorder %s125_s27, %s232_s1 }
  0x17   :  { %p131_p10 = pnand %p129_p9, %p126_p8 }
  0x19   :  { %134 = shalt.err (!%p131_p10)
}
  0x1a   :  { %s135_s4 = scalar_lea.vmem %s40_s24, 256  ;;  %p140_p12 = scmp.lt.s32.totalorder %s40_s24, %s40_s24 }
  0x1b   :  { %p136_p11 = scmp.ne.s32.totalorder %s40_s24, %s135_s4  ;;  %p141_p13 = scmp.lt.s32.totalorder %s135_s4, %s135_s4 }
  0x1d   :  { %p142_p0 = por %p141_p13, %p140_p12 }
  0x1f   :  { %p143_p1 = pnand %p142_p0, %p136_p11 }
  0x21   :  { %146 = shalt.err (!%p143_p1)
}
  0x22   :  { %45 = dma.hbm_to_vmem [thread:$0]  %s232_s1, 256, %s40_s24, [#allocation6], %s176_s19, %s176_s19, %s177_s20  }
  0x23   :  { %169 = dma.done.wait [#allocation3], 256  }
  0x24   :  { %170 = vsyncadd [#allocation3], 4294967040 }
  0x25   :  { %171 = dma.done.wait [#allocation6], 256  }
  0x26   :  { %172 = vsyncadd [#allocation6], 4294967040  ;;  %v60_v0 = vld [vmem:[#allocation2] sm:$0xff]  ;;  %v61_v1 = vld [vmem:[#allocation2 + $0x8] sm:$0xff]  ;;  %s179_s6 = smov [#allocation7]  }
  0x27   :  { %v62_v2 = vld [vmem:[#allocation5] sm:$0xff]  ;;  %v63_v3 = vld [vmem:[#allocation5 + $0x8] sm:$0xff]  ;;  %s83_s7 = sshll.u32 %s179_s6, 4  ;;  %s84_s7 = int_to_ptr.vmem [resolvable:$true] %s83_s7 }
  0x28   :  { %v64_v4 = vsub.f32 %v60_v0, %v62_v2  ;;  %v65_v5 = vsub.f32 %v61_v1, %v63_v3  ;;  %s147_s8 = scalar_lea.vmem %s84_s7, 128  ;;  %p152_p3 = scmp.lt.s32.totalorder %s84_s7, %s84_s7 }
  0x29   :  { %p148_p2 = scmp.ne.s32.totalorder %s84_s7, %s147_s8  ;;  %p153_p4 = scmp.lt.s32.totalorder %s147_s8, %s147_s8 }
  0x2a   :  { %v66_v6 = vmul.f32 %v64_v4, %v64_v4  ;;  %v67_v7 = vmul.f32 %v65_v5, %v65_v5 }
  0x2b   :  { %p154_p5 = por %p153_p4, %p152_p3 }
  0x2c   :  { %v68_v8 = vadd.f32 %v67_v7, %v66_v6 }
  0x2d   :  { %p155_p6 = pnand %p154_p5, %p148_p2 }
  0x2e   :  { %76 = vst [vmem:[#allocation7] sm:$0xff] %v68_v8 }
  0x2f   :  { %158 = shalt.err (!%p155_p6)
}
  0x30   :  { %s159_s10 = scalar_lea.hbm %s233_s2, 128 }
  0x31   :  { %p160_p7 = scmp.ne.s32.totalorder %s233_s2, %s159_s10  ;;  %p163_p8 = scmp.lt.u32.totalorder %s159_s10, %s233_s2 }
  0x33   :  { %p165_p9 = pnand %p163_p8, %p160_p7 }
  0x35   :  { %168 = shalt.err (!%p165_p9)
}
  0x36   :  { %86 = dma.vmem_to_hbm [thread:$0]  %s84_s7, 128, %s233_s2, [#allocation4]  }
  0x37   :  { %173 = dma.done.wait [#allocation4], 128  }
  0x38   :  { %174 = vsyncadd [#allocation4], 4294967168 }
  0x39   :  { %90 = vsyncpa [#allocation3], 1 }
  0x3a   :  { %91 = vsyncpa [#allocation6], 1 }
  0x3b   :  { %92 = vsyncpa [#allocation4], 1 }

</bundles_post_ra>
